<compile_context>
chip_gen: v6e
topology: v6e:2x2x1
jax: 0.10.0
libtpu: 0.0.40
codegen_flags: <defaults>
</compile_context>

<pallas_src>
import functools

import jax
import jax.numpy as jnp
from jax.experimental import pallas as pl
from jax.experimental.pallas import tpu as pltpu


def _round_up(v, m):
    return ((v + m - 1) // m) * m


def _cdiv(a, b):
    return -(-a // b)


# -----------------------------------------------------------------------------
# Pallas kernel: tiled  out = relu(A @ H + b)  with an f32 VMEM scratch
# accumulator.  grid = (M_tiles, K_tiles); K is the relation-folded contraction
# axis ((relations + root) x source nodes).  Output block is constant along K
# and is stored once in the last-K epilogue.
# -----------------------------------------------------------------------------
def _rgcn_kernel(a_ref, h_ref, b_ref, o_ref, acc_ref, *, tk, h_resident):
    k = pl.program_id(1)

    @pl.when(k == 0)
    def _():
        acc_ref[...] = jnp.zeros_like(acc_ref)

    if h_resident:
        # H is fully resident in VMEM (constant index_map -> DMA'd once);
        # slice the current K window.  Start is tk-aligned (tk % 128 == 0),
        # so the slice does not split (8,128) tiles.
        start = pl.multiple_of(k * tk, tk)
        h_blk = h_ref[pl.ds(start, tk), :]
    else:
        h_blk = h_ref[...]

    # bf16 x bf16 -> f32 accumulate on the MXU.
    acc_ref[...] += jnp.dot(a_ref[...], h_blk, preferred_element_type=jnp.float32)

    @pl.when(k == pl.num_programs(1) - 1)
    def _():
        # Epilogue: bias (broadcast over sublanes) + ReLU, single cast + store.
        o_ref[...] = jnp.maximum(acc_ref[...] + b_ref[...], 0.0).astype(o_ref.dtype)


def _rgcn_pallas(adj, h_p, bias_p, tm, tk, out_dtype):
    n_m, k_tot = adj.shape
    c_pad = h_p.shape[1]
    grid = (n_m // tm, k_tot // tk)

    # Hold H fully resident in VMEM when small enough (removes M_tiles redundant
    # HBM reads of H); otherwise stream (tk, c_pad) blocks along K.
    h_bytes = k_tot * c_pad * h_p.dtype.itemsize
    h_resident = h_bytes <= 8 * 1024 * 1024
    if h_resident:
        h_spec = pl.BlockSpec((k_tot, c_pad), lambda m, k: (0, 0))
    else:
        h_spec = pl.BlockSpec((tk, c_pad), lambda m, k: (k, 0))

    # Double-buffered VMEM budget -> explicit scoped-VMEM limit (v5e default is
    # only 16 MiB; cap at 48 MiB to leave headroom under v7x's 64 MiB physical).
    out_isz = jnp.dtype(out_dtype).itemsize
    est = (2 * tm * tk * 2                                        # A (bf16)
           + (2 * h_bytes if h_resident else 2 * tk * c_pad * 2)  # H (bf16)
           + 2 * tm * c_pad * out_isz                             # output tiles
           + tm * c_pad * 4                                       # f32 accumulator
           + 2 * c_pad * 4)                                       # bias row
    vmem_limit = int(min(48 * 1024 * 1024, max(32 * 1024 * 1024, 2 * est)))

    kernel = functools.partial(_rgcn_kernel, tk=tk, h_resident=h_resident)
    return pl.pallas_call(
        kernel,
        out_shape=jax.ShapeDtypeStruct((n_m, c_pad), out_dtype),
        grid_spec=pltpu.PrefetchScalarGridSpec(
            num_scalar_prefetch=0,
            grid=grid,
            in_specs=[
                pl.BlockSpec((tm, tk), lambda m, k: (m, k)),    # A tile (bf16)
                h_spec,                                         # H (bf16)
                pl.BlockSpec((1, c_pad), lambda m, k: (0, 0)),  # bias row (f32)
            ],
            out_specs=pl.BlockSpec((tm, c_pad), lambda m, k: (m, 0)),
            scratch_shapes=[pltpu.VMEM((tm, c_pad), jnp.float32)],
        ),
        compiler_params=pltpu.CompilerParams(
            dimension_semantics=("parallel", "arbitrary"),
            vmem_limit_bytes=vmem_limit,
        ),
    )(adj, h_p, bias_p)


# -----------------------------------------------------------------------------
# Host-side (XLA glue): build lane-dense, hardware-aligned operands.
# -----------------------------------------------------------------------------
def _build_operands(x, edge_index, edge_type, w_rel, w_root, bias,
                    num_relations, tile_m, tile_k):
    """Returns (adj, h_p, bias_p, tm, tk) such that
        relu(adj @ h_p + bias_p)[:N, :Cout] == relu(RGCN(x))."""
    N, _ = x.shape
    Cout = w_root.shape[1]
    R = num_relations
    xf = x.astype(jnp.float32)

    # Hardware-aligned sizes with minimal padding: pick tile COUNTS first, then
    # the smallest aligned tile (avoids the round-up-to-tile traffic blowup).
    c_pad = _round_up(Cout, 128)

    n_m8 = _round_up(N, 8)
    m_tiles = _cdiv(n_m8, tile_m)
    if m_tiles == 1 and n_m8 >= 16:
        m_tiles = 2                       # keep both v7x TensorCores busy
    tm = _round_up(_cdiv(n_m8, m_tiles), 8)
    n_m = tm * m_tiles

    k_raw = (R + 1) * N                   # R relation blocks + 1 root block
    k128 = _round_up(k_raw, 128)
    k_tiles = _cdiv(k128, tile_k)
    tk = _round_up(_cdiv(k128, k_tiles), 128)
    k_tot = tk * k_tiles

    src = edge_index[0].astype(jnp.int32)
    dst = edge_index[1].astype(jnp.int32)
    et = edge_type.astype(jnp.int32)

    # 'mean' aggregation: bake 1/deg into the scattered values (no separate
    # normalization pass).  Built in f32; cast to bf16 exactly once at the end.
    counts = jnp.zeros((R, N), jnp.float32).at[et, dst].add(1.0)
    inv_deg = 1.0 / jnp.maximum(counts, 1.0)   # zero in-degree -> term is 0 (PyG)
    edge_val = inv_deg[et, dst]

    # Relation-folded adjacency + identity block for the root/self term (folds
    # x @ W_root into the same single MXU matmul; no separate base stream).
    cols = et * N + src
    node = jnp.arange(N, dtype=jnp.int32)
    adj = (jnp.zeros((n_m, k_tot), jnp.float32)
           .at[dst, cols].add(edge_val)
           .at[node, R * N + node].set(1.0)
           .astype(jnp.bfloat16))
    # TODO(synk): for a static graph, hoist adj/H construction out of the
    # per-call path (or build A tiles in-kernel from CSR edge lists via scalar
    # prefetch) to avoid the dense O(R*N^2) scatter round trip every call.

    # H rows: [r*N + j] = x_j @ W_r (r < R),  [R*N + j] = x_j @ W_root.
    h_rel = jnp.einsum("nc,rco->rno", xf,
                       w_rel.astype(jnp.float32)).reshape(R * N, Cout)
    h_root = xf @ w_root.astype(jnp.float32)
    h = jnp.concatenate([h_rel, h_root], axis=0)
    h_p = jnp.zeros((k_tot, c_pad), jnp.bfloat16).at[:k_raw, :Cout].set(
        h.astype(jnp.bfloat16))

    bias_p = jnp.zeros((1, c_pad), jnp.float32).at[0, :Cout].set(
        bias.astype(jnp.float32))

    return adj, h_p, bias_p, tm, tk


def rgcn_relu(x, edge_index, edge_type, w_rel, w_root, bias, num_relations,
              *, tile_m=512, tile_k=4096):
    """relu(RGCNConv(x, edge_index, edge_type)) with aggr='mean', bias=True."""
    N = x.shape[0]
    Cout = w_root.shape[1]
    adj, h_p, bias_p, tm, tk = _build_operands(
        x, edge_index, edge_type, w_rel, w_root, bias, num_relations,
        tile_m, tile_k)
    out_p = _rgcn_pallas(adj, h_p, bias_p, tm, tk, x.dtype)
    return out_p[:N, :Cout]


def dense_graph_block(x, edge_index, edge_type, w_rel, w_root, bias,
                      num_relations, *, tile_m=512, tile_k=4096):
    """Forward of DenseGraphBlock: (concat([x, relu(RGCN(x))], 1), edge_index)."""
    out = rgcn_relu(x, edge_index, edge_type, w_rel, w_root, bias,
                    num_relations, tile_m=tile_m, tile_k=tile_k)
    # TODO(synk): fuse the concat into the kernel epilogue (write the ReLU tile
    # into the tail columns of a donated concat buffer) when this block is
    # stacked many times.
    return jnp.concatenate([x, out], axis=1), edge_index


if __name__ == "__main__":
    key = jax.random.PRNGKey(0)
    N = 16      # number of nodes
    Cin = 8     # in_channels
    Cout = 16   # out_channels
    R = 3       # num_relations
    E = 32      # number of edges

    k_x, k_src, k_dst, k_et, k_w, k_root, k_b = jax.random.split(key, 7)

    x = jax.random.normal(k_x, (N, Cin), jnp.float32)
    edge_index = jnp.stack(
        [
            jax.random.randint(k_src, (E,), 0, N, jnp.int32),
            jax.random.randint(k_dst, (E,), 0, N, jnp.int32),
        ],
        axis=0,
    )
    edge_type = jax.random.randint(k_et, (E,), 0, R, jnp.int32)

    w_rel = jax.random.normal(k_w, (R, Cin, Cout), jnp.float32) * 0.1
    w_root = jax.random.normal(k_root, (Cin, Cout), jnp.float32) * 0.1
    bias = jax.random.normal(k_b, (Cout,), jnp.float32) * 0.1

    cat_out, ei_out = dense_graph_block(
        x, edge_index, edge_type, w_rel, w_root, bias, R)
    cat_out = jax.block_until_ready(cat_out)

    assert cat_out.shape == (N, Cin + Cout)
    assert ei_out.shape == (2, E)
    out = cat_out[:, Cin:]

    # (1) Strict check: kernel vs plain-jnp math on the SAME padded bf16 operands.
    adj, h_p, bias_p, _, _ = _build_operands(
        x, edge_index, edge_type, w_rel, w_root, bias, R, 512, 4096)
    ref_strict = jnp.maximum(
        adj.astype(jnp.float32) @ h_p.astype(jnp.float32) + bias_p, 0.0)[:N, :Cout]
    assert jnp.allclose(out, ref_strict, atol=1e-4, rtol=1e-4), "strict check failed"

    # (2) Loose check vs the pure-f32 dense RGCN reference (bf16 adj/H tolerance).
    adj_f = jnp.zeros((R, N, N), jnp.float32).at[
        edge_type, edge_index[1], edge_index[0]].add(1.0)
    adj_f = adj_f / jnp.maximum(adj_f.sum(axis=2, keepdims=True), 1.0)
    ref = x @ w_root + bias[None, :]
    for r in range(R):
        ref = ref + adj_f[r] @ (x @ w_rel[r])
    ref = jnp.maximum(ref, 0.0)
    assert jnp.allclose(out, ref, atol=3e-2, rtol=3e-2), "loose check failed"
    assert jnp.allclose(cat_out[:, :Cin], x), "concat check failed"

    print("KERNEL_OK")
</pallas_src>

<mosaic_0001>
module attributes {stable_mosaic.version = 11 : i64} {
  func.func @_rgcn_kernel(%arg0: i32, %arg1: i32, %arg2: memref<8x128xbf16, #tpu.memory_space<vmem>>, %arg3: memref<128x128xbf16, #tpu.memory_space<vmem>>, %arg4: memref<1x128xf32, #tpu.memory_space<vmem>>, %arg5: memref<8x128xf32, #tpu.memory_space<vmem>>, %arg6: memref<8x128xf32, #tpu.memory_space<vmem>>) attributes {dimension_semantics = [#tpu.dimension_semantics<parallel>, #tpu.dimension_semantics<arbitrary>], iteration_bounds = array<i64: 2, 1>, scalar_prefetch = 0 : i64, scratch_operands = 1 : i64, tpu.core_type = #tpu.core_type<tc>, window_params = [{transform_indices = @transform_0, window_bounds = array<i64: 8, 128>}, {pipeline_mode = #tpu.pipeline_mode<synchronous>, transform_indices = @transform_1, window_bounds = array<i64: 128, 128>}, {pipeline_mode = #tpu.pipeline_mode<synchronous>, transform_indices = @transform_2, window_bounds = array<i64: 1, 128>}, {transform_indices = @transform_3, window_bounds = array<i64: 8, 128>}]} {
    %c0_i32 = arith.constant 0 : i32
    %0 = arith.cmpi eq, %arg1, %c0_i32 : i32
    %1 = arith.extui %0 : i1 to i32
    %c0_i32_0 = arith.constant 0 : i32
    %2 = arith.cmpi ne, %1, %c0_i32_0 : i32
    scf.if %2 {
      %cst_9 = arith.constant 0.000000e+00 : f32
      %15 = vector.broadcast %cst_9 : f32 to vector<8x128xf32>
      %c0_10 = arith.constant 0 : index
      %c0_11 = arith.constant 0 : index
      %16 = vector.load %arg6[%c0_10, %c0_11] : memref<8x128xf32, #tpu.memory_space<vmem>>, vector<8x128xf32>
      tpu.vector_store %arg6[%c0_10, %c0_11], %15 {strides = array<i32>} : memref<8x128xf32, #tpu.memory_space<vmem>>, vector<8x128xf32>,
    } else {
    }
    %c128_i32 = arith.constant 128 : i32
    %3 = arith.muli %arg1, %c128_i32 : i32
    %4 = tpu.assume_multiple %3, 128 : i32
    %5 = arith.index_cast %4 : i32 to index
    %c0 = arith.constant 0 : index
    %6 = vector.load %arg3[%5, %c0] : memref<128x128xbf16, #tpu.memory_space<vmem>>, vector<128x128xbf16>
    %c0_1 = arith.constant 0 : index
    %c0_2 = arith.constant 0 : index
    %7 = vector.load %arg6[%c0_1, %c0_2] : memref<8x128xf32, #tpu.memory_space<vmem>>, vector<8x128xf32>
    %c0_3 = arith.constant 0 : index
    %c0_4 = arith.constant 0 : index
    %8 = vector.load %arg2[%c0_3, %c0_4] : memref<8x128xbf16, #tpu.memory_space<vmem>>, vector<8x128xbf16>
    %cst = arith.constant dense<0.000000e+00> : vector<8x128xf32>
    %9 = tpu.matmul %8, %6, %cst {dimension_numbers = #tpu.dot_dimension_numbers<[1], [0], [0], [1], [0, 0, 1, 1], [], []>} : vector<8x128xbf16>, vector<128x128xbf16>, vector<8x128xf32> -> vector<8x128xf32>
    %10 = arith.addf %7, %9 : vector<8x128xf32>
    %c0_5 = arith.constant 0 : index
    %c0_6 = arith.constant 0 : index
    %11 = vector.load %arg6[%c0_5, %c0_6] : memref<8x128xf32, #tpu.memory_space<vmem>>, vector<8x128xf32>
    tpu.vector_store %arg6[%c0_5, %c0_6], %10 {strides = array<i32>} : memref<8x128xf32, #tpu.memory_space<vmem>>, vector<8x128xf32>,
    %c0_i32_7 = arith.constant 0 : i32
    %12 = arith.cmpi eq, %arg1, %c0_i32_7 : i32
    %13 = arith.extui %12 : i1 to i32
    %c0_i32_8 = arith.constant 0 : i32
    %14 = arith.cmpi ne, %13, %c0_i32_8 : i32
    scf.if %14 {
      %c0_9 = arith.constant 0 : index
      %c0_10 = arith.constant 0 : index
      %15 = vector.load %arg6[%c0_9, %c0_10] : memref<8x128xf32, #tpu.memory_space<vmem>>, vector<8x128xf32>
      %c0_11 = arith.constant 0 : index
      %c0_12 = arith.constant 0 : index
      %16 = vector.load %arg4[%c0_11, %c0_12] : memref<1x128xf32, #tpu.memory_space<vmem>>, vector<1x128xf32>
      %17 = vector.broadcast %16 : vector<1x128xf32> to vector<8x128xf32>
      %18 = arith.addf %15, %17 : vector<8x128xf32>
      %cst_13 = arith.constant 0.000000e+00 : f32
      %19 = vector.broadcast %cst_13 : f32 to vector<8x128xf32>
      %20 = arith.maximumf %18, %19 : vector<8x128xf32>
      %c0_14 = arith.constant 0 : index
      %c0_15 = arith.constant 0 : index
      %21 = vector.load %arg5[%c0_14, %c0_15] : memref<8x128xf32, #tpu.memory_space<vmem>>, vector<8x128xf32>
      tpu.vector_store %arg5[%c0_14, %c0_15], %20 {strides = array<i32>} : memref<8x128xf32, #tpu.memory_space<vmem>>, vector<8x128xf32>,
    } else {
    }
    return
  }
  func.func @transform_0(%arg0: i32, %arg1: i32) -> (i32, i32) {
    %c0_i32 = arith.constant 0 : i32
    return %arg0, %arg1 : i32, i32
  }
  func.func @transform_1(%arg0: i32, %arg1: i32) -> (i32, i32) {
    %c0_i32 = arith.constant 0 : i32
    %c0_i32_0 = arith.constant 0 : i32
    %c0_i32_1 = arith.constant 0 : i32
    return %c0_i32, %c0_i32_0 : i32, i32
  }
  func.func @transform_2(%arg0: i32, %arg1: i32) -> (i32, i32) {
    %c0_i32 = arith.constant 0 : i32
    %c0_i32_0 = arith.constant 0 : i32
    %c0_i32_1 = arith.constant 0 : i32
    return %c0_i32, %c0_i32_0 : i32, i32
  }
  func.func @transform_3(%arg0: i32, %arg1: i32) -> (i32, i32) {
    %c0_i32 = arith.constant 0 : i32
    %c0_i32_0 = arith.constant 0 : i32
    return %arg0, %c0_i32 : i32, i32
  }
}

</mosaic_0001>

<bundles_post_ra>
// kernel: tpu_custom_call.1
= control target key start
LH: loop header
LB: loop body
LE: loop exit
PB: predicated region body
PF: predicated region fallthrough
CT: control target
= control target key end

     0   :  { %8 = vsyncpa [#allocation4], 0  ;;  %s945_s0 = inlined_call_operand.hbm [shape: bf16[16,128], index: 0, kind: input, shape index: {}]   ;;  %s946_s1 = inlined_call_operand.hbm [shape: bf16[128,128], index: 1, kind: input, shape index: {}]   ;;  %s947_s2 = inlined_call_operand.vmem [shape: f32[1,128], index: 2, kind: input, shape index: {}]   ;;  %s948_s3 = inlined_call_operand.hbm [shape: f32[16,128], index: 3, kind: output, shape index: {}]  }
   0x1   :  { %10 = vsyncpa [#allocation4 + $0x1], 0 }
   0x2   :  { %11 = vsyncpa [#allocation7], 0 }
   0x3   :  { %12 = vsyncpa [#allocation5], 0 }
   0x4   :  { %14 = vsyncpa [#allocation5 + $0x1], 0  ;;  %s759_s12 = smov 0   ;;  %s761_s13 = smov 0  }
   0x5   :  { %s763_s14 = smov 0   ;;  %s765_s15 = smov 0  }
   0x6   :  { %s767_s16 = smov 0   ;;  %s769_s17 = smov 0  }
   0x7 LB: > { %s454_s18 = sadd.s32 4294967295, %s730_s17   ;;  %s455_s19 = sadd.s32 4294967294, %s730_s17   ;;  %s730_s17 = sphi %s769_s17, %s20_s17   ;;  %s726_s16 = sphi %s767_s16, %s966_s16   ;;  %s722_s15 = sphi %s765_s15, %s965_s15   ;;  %s718_s14 = sphi %s763_s14, %s964_s14   ;;  %s714_s13 = sphi %s761_s13, %s963_s13   ;;  %s710_s12 = sphi %s759_s12, %s962_s12  }
   0x8   : > { %p54_p0 = scmp.ne.s32.totalorder %s714_s13, %s710_s12  ;;  %p793_p1 = scmp.eq.s32.totalorder %s454_s18, 0 }
   0x9   : > { %p797_p2 = scmp.eq.s32.totalorder %s454_s18, 1  ;;  %p126_p3 = scmp.eq.s32.totalorder %s455_s19, 1 }
   0xa   : > { %p803_p4 = por %p793_p1, %p54_p0  ;;  %p456_p5 = scmp.ge.s32.totalorder %s730_s17, 1 }
   0xb   : > { %p808_p6 = por %p126_p3, %p54_p0  ;;  %p133_p7 = scmp.lt.s32.totalorder %s730_s17, 3 }
   0xc   : > { %s952_s22 = scalar_select %p803_p4, 1, 0 }
   0xd   : > { %s953_s23 = scalar_select %p808_p6, 1, 0 }
   0xe   : > { %p813_p8 = pnand %p456_p5, %p133_p7  ;;  %s732_s25 = smov [#allocation6]  }
   0xf   : > { %s145_s26 = sshll.u32 %s732_s25, 4  ;;  %s32_s28 = sadd.s32 1, %s726_s16  ;;  %s146_s26 = int_to_ptr.vmem [resolvable:$true] %s145_s26 }
  0x10   : > { %p515_p9 = pneg %p813_p8  ;;  %s603_s29 = scalar_lea.vmem %s146_s26, 1024 }
  0x11   : > { %p604_p13 = scmp.ne.s32.totalorder %s146_s26, %s603_s29  ;;  %p611_p5 = scmp.lt.s32.totalorder %s146_s26, %s146_s26 }
  0x12   : > { %p822_p11 = pnand %p515_p9, %p793_p1  ;;  %p612_p7 = scmp.lt.s32.totalorder %s603_s29, %s603_s29 }
  0x14   : > { %p594_p12 = pneg %p822_p11  ;;  %p613_p6 = por %p612_p7, %p611_p5 }
  0x16   : > { %p606_p0 = pnand %p604_p13, %p594_p12 }
  0x18   : > { %p607_p3 = pneg %p606_p0 }
  0x1a   : > { %p614_p4 = pnand %p613_p6, %p607_p3 }
  0x1c   : > { %617 = shalt.err (!%p614_p4)
}
  0x1d   : > { %s733_s30 = smov 64   ;;  %s734_s4 = smov 4  }
  0x1e   : > { %518 = dma.hbm_to_vmem [thread:$0]  (!%p822_p11), %s946_s1, 1024, %s146_s26, [#allocation7], %s733_s30, %s733_s30, %s734_s4  }
  0x1f   : > { %p34_p6 = scmp.ge.s32.totalorder %s32_s28, 2  ;;  %s41_s7 = sadd.s32 1, %s718_s14 }
  0x20   : > { %p48_p4 = scmp.ne.s32.totalorder %s718_s14, %s714_s13  ;;  %p49_p9 = scmp.eq.s32.totalorder %s730_s17, 0 }
  0x21   : > { %s968_s28 = smov (%p34_p6, %s32_s28), 0  ;;  %p528_p0 = scmp.lt.s32.totalorder %s730_s17, 2 }
  0x22   : > { %p840_p12 = por %p49_p9, %p48_p4  ;;  %p846_p13 = por %p797_p2, %p48_p4 }
  0x23   : > { %s36_s10 = ssub.s32 %s726_s16, %s968_s28  ;;  %s162_s11 = sand.u32 1, %s718_s14  }
  0x24   : > { %p39_p11 = scmp.eq.s32.totalorder %s36_s10, 0  ;;  %s459_s18 = sshll.u32 %s162_s11, 2 }
  0x25   : > { %s460_s25 = sshll.u32 %s726_s16, 6  ;;  %s166_s30 = scalar_lea.vmem [#allocation3], %s459_s18 }
  0x26   : > { %s855_s19 = scalar_select %p39_p11, %s718_s14, %s41_s7  }
  0x27   : > { %s172_s29 = scalar_lea.hbm %s945_s0, %s460_s25  ;;  %s174_s4 = sshll.u32 %s166_s30, 4  ;;  %s175_s4 = int_to_ptr.vmem [resolvable:$true] %s174_s4 }
  0x28   : > { %p863_p2 = pnand %p528_p0, %p840_p12  ;;  %s163_s5 = scalar_lea.sflag [#allocation4], %s162_s11 }
  0x29   : > { %s631_s6 = scalar_lea.vmem %s175_s4, 64  ;;  %s735_s7 = smov [#allocation3]  }
  0x2a   : > { %p620_p3 = pneg %p863_p2  ;;  %p632_p5 = scmp.ne.s32.totalorder %s175_s4, %s631_s6 }
  0x2b   : > { %s636_s10 = sshll.u32 %s735_s7, 4  ;;  %s637_s10 = int_to_ptr.vmem [resolvable:$false] %s636_s10 }
  0x2c   : > { %p634_p7 = pnand %p632_p5, %p620_p3  ;;  %s638_s25 = scalar_lea.vmem %s637_s10, 128 }
  0x2d   : > { %p639_p4 = scmp.lt.s32.totalorder %s175_s4, %s637_s10  ;;  %p640_p9 = scmp.lt.s32.totalorder %s638_s25, %s631_s6 }
  0x2e   : > { %p635_p6 = pneg %p634_p7 }
  0x2f   : > { %p641_p11 = por %p640_p9, %p639_p4 }
  0x31   : > { %p642_p10 = pnand %p641_p11, %p635_p6 }
  0x33   : > { %645 = shalt.err (!%p642_p10)
}
  0x34   : > { %522 = dma.hbm_to_vmem [thread:$0]  (!%p863_p2), %s172_s29, 64, %s175_s4, %s163_s5  }
  0x35   : > { %183 = sbr.rel (%p813_p8) target bundleno = 305 (0x131), region = 32  ;;  %s874_s8 = sand.u32 (!%p813_p8), 1, %s714_s13  }
  0x36   : > { %s462_s11 = sshll.u32 (!%p813_p8), %s874_s8, 2  ;;  %s186_s18 = scalar_lea.sflag (!%p813_p8), [#allocation4], %s874_s8 }
  0x37   : > { %s878_s26 = scalar_lea.vmem (!%p813_p8), [#allocation3], %s462_s11  ;;  %p959_p12 = scmp.ne.s32.totalorder (!%p813_p8), %s952_s22, 0 }
  0x3a   : > { %697 = dma.done.wait (%p959_p12), %s186_s18, 64  }
  0x3b   : > { %699 = vsyncadd (%p959_p12), %s186_s18, 4294967232 }
  0x3c   : > { %701 = dma.done.wait (%p793_p1), [#allocation7], 1024  }
  0x3d   : > { %703 = vsyncadd (%p793_p1), [#allocation7], 4294966272  ;;  %v736_v0 = vmov 0.0   ;;  %vm737_vm0 = vmmov 0   ;;  %v584_v1 = vld [vmem:[#allocation6 + $0x38] sm:$0xff]   ;;  %v585_v2 = vld [vmem:[#allocation6 + $0x30] sm:$0xff]  }
  0x3e   : > { %487 = vmatprep.subr.bf16.mxu0 %v736_v0  ;;  %503 = vmatprep.mubr.msk.bf16.mxu0 %vm737_vm0, %v736_v0  ;;  %v586_v3 = vld [vmem:[#allocation6 + $0x28] sm:$0xff]   ;;  %v587_v4 = vld [vmem:[#allocation6 + $0x20] sm:$0xff]   ;;  %v588_v5 = vld [vmem:[#allocation6 + $0x18] sm:$0xff]   ;;  %s464_s20 = sshll.u32 %s874_s8, 3  ;;  %s475_s27 = sshll.u32 %s722_s15, 7 }
  0x3f   : > { %488 = vmatpush3.bf16.msra.mxu0 %v584_v1  ;;  %v589_v6 = vld [vmem:[#allocation6 + $0x10] sm:$0xff]   ;;  %v590_v7 = vld [vmem:[#allocation6 + $0x8] sm:$0xff]   ;;  %v591_v8 = vld [vmem:[#allocation6] sm:$0xff]   ;;  %s215_s29 = scalar_lea.vmem [#allocation8], %s464_s20  ;;  %s897_s5 = scalar_lea.hbm %s948_s3, %s475_s27 }
  0x40   : > { %489 = vmatprep.subr.bf16.mxu0 %v736_v0  ;;  %v244_v9 = vld [vmem:[%s878_s26] sm:$0xf]  ;;  %s363_s30 = sshll.u32 %s215_s29, 4  ;;  %s350_s6 = scalar_lea.sflag [#allocation5], %s874_s8  ;;  %s899_s30 = int_to_ptr.vmem [resolvable:$true] %s363_s30 }
  0x41   : > { %v473_v10 = vld [vmem:[%s947_s2] ss:$0 sm:$0xff]  ;;  %s646_s15 = scalar_lea.vmem %s899_s30, 128  ;;  %s738_s7 = smov [#allocation8]  }
  0x42   : > { %p647_p1 = scmp.ne.s32.totalorder %s899_s30, %s646_s15  ;;  %s650_s10 = sshll.u32 %s738_s7, 4  ;;  %s651_s10 = int_to_ptr.vmem [resolvable:$false] %s650_s10 }
  0x43   : > { %490 = vmatpush3.bf16.msra.mxu0 %v585_v2  ;;  %s652_s25 = scalar_lea.vmem %s651_s10, 256  ;;  %p653_p0 = scmp.lt.s32.totalorder %s899_s30, %s651_s10 }
  0x44   : > { %491 = vmatprep.subr.bf16.mxu0 %v736_v0  ;;  %p648_p8 = pnand %p647_p1, %p846_p13  ;;  %p654_p2 = scmp.lt.s32.totalorder %s652_s25, %s646_s15 }
  0x46   : > { %p649_p10 = pneg %p648_p8  ;;  %p655_p3 = por %p654_p2, %p653_p0 }
  0x47   : > { %492 = vmatpush3.bf16.msra.mxu0 %v586_v3 }
  0x48   : > { %493 = vmatprep.subr.bf16.mxu0 %v736_v0  ;;  %p656_p5 = pnand %p655_p3, %p649_p10 }
  0x4b   : > { %494 = vmatpush3.bf16.msra.mxu0 %v587_v4 }
  0x4c   : > { %495 = vmatprep.subr.bf16.mxu0 %v736_v0 }
  0x4f   : > { %496 = vmatpush3.bf16.msra.mxu0 %v588_v5 }
  0x50   : > { %497 = vmatprep.subr.bf16.mxu0 %v736_v0 }
  0x53   : > { %498 = vmatpush3.bf16.msra.mxu0 %v589_v6 }
  0x54   : > { %499 = vmatprep.subr.bf16.mxu0 %v736_v0 }
  0x57   : > { %500 = vmatpush3.bf16.msra.mxu0 %v590_v7 }
  0x58   : > { %501 = vmatprep.subr.bf16.mxu0 %v736_v0 }
  0x5b   : > { %502 = vmatpush3.bf16.msra.mxu0 %v591_v8 }
  0x5e   : > { %504 = vmatmul.mubr.bf16.vlgmr.msra.gmra.mxu0 %v244_v9 }
 0x11e   : > { %v327_v11 = vpop.f32.mrf.mxu0 }
 0x11f   : > { %v346_v12 = vadd.f32 %v473_v10, %v327_v11 }
 0x120   : > { %v505_v13 = vpop.f32.mrf.mxu0 }
 0x121   : > { %v347_v14 = vmax.f32 %v346_v12, 0.0 }
 0x122   : > { %v330_v15 = vpop.f32.mrf.mxu0 }
 0x123   : > { %348 = vst [vmem:[%s215_s29] sm:$0xff] %v347_v14 }
 0x124   : > { %v506_v16 = vpop.f32.mrf.mxu0 }
 0x125   : > { %659 = shalt.err (!%p656_p5)
}
 0x126   : > { %s660_s11 = scalar_lea.hbm %s897_s5, 128  ;;  %s664_s26 = scalar_lea.hbm %s948_s3, 256 }
 0x127   : > { %p661_p7 = scmp.ne.s32.totalorder %s897_s5, %s660_s11  ;;  %p665_p9 = scmp.lt.s32.totalorder %s897_s5, %s948_s3 }
 0x128   : > { %p666_p11 = scmp.lt.s32.totalorder %s664_s26, %s660_s11 }
 0x129   : > { %p662_p6 = pnand %p661_p7, %p846_p13 }
 0x12a   : > { %p667_p12 = por %p666_p11, %p665_p9 }
 0x12b   : > { %p663_p4 = pneg %p662_p6 }
 0x12d   : > { %p668_p1 = pnand %p667_p12, %p663_p4 }
 0x12f   : > { %671 = shalt.err (!%p668_p1)
}
 0x130   : > { %513 = dma.vmem_to_hbm [thread:$0]  (%p846_p13), %s899_s30, 128, %s897_s5, %s350_s6  }
 0x131 PF: > { %s375_s24 = sand.u32 1, %s710_s12   ;;  %p960_p8 = scmp.ne.s32.totalorder %s953_s23, 0 }
 0x132   : > { %p961_p10 = scmp.ge.s32.totalorder %s730_s17, 2  ;;  %s376_s27 = scalar_lea.sflag [#allocation5], %s375_s24 }
 0x134   : > { %p524_p0 = pnand %p961_p10, %p960_p8 }
 0x136   : > { %p525_p2 = pneg %p524_p0 }
 0x138   : > { %705 = dma.done.wait (%p525_p2), %s376_s27, 128  }
 0x139   : > { %707 = vsyncadd (%p525_p2), %s376_s27, 4294967168  ;;  %s20_s17 = sadd.s32 1, %s730_s17   ;;  %s962_s12 = smov %s714_s13 }
 0x13a   : > { %p17_p3 = scmp.ge.s32.totalorder %s20_s17, 4   ;;  %s963_s13 = smov %s718_s14 }
 0x13b   : > { %s964_s14 = smov %s855_s19  ;;  %s965_s15 = smov %s726_s16 }
 0x13c   : > { %s966_s16 = smov %s968_s28  ;;  %19 = sbr.rel (!%p17_p3) target bundleno = 7 (0x7), region = 90 }
 0x141   :  { %381 = vsyncpa [#allocation4], 1 }
 0x142   :  { %383 = vsyncpa [#allocation4 + $0x1], 1 }
 0x143   :  { %384 = vsyncpa [#allocation7], 1 }
 0x144   :  { %385 = vsyncpa [#allocation5], 1 }
 0x145   :  { %387 = vsyncpa [#allocation5 + $0x1], 1 }

</bundles_post_ra>
